<compile_context>
chip_gen: v5e
topology: v5e:2x2
jax: 0.10.0
libtpu: 0.0.40
codegen_flags: <defaults>
</compile_context>

<pallas_src>
import jax
import jax.numpy as jnp
from jax.experimental import pallas as pl
from jax.experimental.pallas import tpu as pltpu


_TARGET_HALF_BYTES = 2 << 20  # ~2 MiB per channel-half per block (per buffer)


def _mfm_kernel(x_ref, o_ref):
    # x_ref block: (1, 2, rows_tile, lanes); o_ref block: (1, rows_tile, lanes)
    x = x_ref[...]
    o_ref[...] = jnp.maximum(x[:, 0], x[:, 1])


def _rows_tile(rows: int, n: int, itemsize: int) -> int:
    """Pick the sublane-row tile for the lane-dense (rows x 128) view."""
    # Sublane granule: 8 rows for 32-bit, 16 for bf16, 32 for int8/fp8.
    granule = 8 * max(1, 4 // itemsize)
    target = max(granule,
                 ((_TARGET_HALF_BYTES // (128 * itemsize)) // granule) * granule)
    r = min(rows, target)
    # Shrink so the fully-parallel grid has >= ~8 steps (keeps both v7x
    # TensorCores busy for small batches); stop at one granule.
    while r > granule and n * pl.cdiv(rows, r) < 8:
        r = max(granule, ((r // 2) // granule) * granule)
    # (8,128) rule: second-to-last block dim must be a multiple of 8 unless it
    # equals the full extent.  By construction r is either a multiple of the
    # granule (>= 8) or the full extent; this is just a safety net.
    if r < rows and r % 8 != 0:
        r = rows
    return r


def mfm_forward(x: jax.Array, out_channels: int) -> jax.Array:
    """MFM activation. x: (N, 2*OC, H, W) -> (N, OC, H, W)."""
    n, c, h, w = x.shape
    assert c == 2 * out_channels, "input channels must be 2 * out_channels"
    oc = out_channels
    hw = h * w
    f = oc * hw  # per-half flattened feature size (contiguous in NCHW)
    itemsize = jnp.dtype(x.dtype).itemsize

    cost = pl.CostEstimate(flops=n * f, transcendentals=0,
                           bytes_accessed=3 * n * f * itemsize)

    if f % 128 == 0:
        # --- Lane-dense main path: each half viewed as (rows, 128). ---
        rows = f // 128
        r_tile = _rows_tile(rows, n, itemsize)
        x_v = x.reshape(n, 2, rows, 128)                 # free reshape (row-major)
        grid = (n, pl.cdiv(rows, r_tile))
        in_spec = pl.BlockSpec((1, 2, r_tile, 128), lambda i, j: (i, 0, j, 0))
        out_spec = pl.BlockSpec((1, r_tile, 128), lambda i, j: (i, j, 0))
        out_shape = jax.ShapeDtypeStruct((n, rows, 128), x.dtype)
        semantics = ("parallel", "parallel")
    else:
        # --- Fallback (H*W not a multiple of 128): sublane-dense OC axis. ---
        # View (N, 2, OC, H*W): OC on sublanes (tiled in multiples of 8),
        # H*W on lanes (full extent when small, 128-multiples when large).
        lane_cap = max(128, ((_TARGET_HALF_BYTES // (8 * itemsize)) // 128) * 128)
        if hw <= lane_cap:
            hw_tile = hw                         # full extent -> (8,128) exemption
            lanes = pl.cdiv(hw, 128) * 128       # padded lane width (VMEM budget)
        else:
            hw_tile = lanes = lane_cap           # multiple of 128; ragged tail masked
        if oc <= 8:
            oc_tile = oc                         # full extent -> exemption
        else:
            oc_tile = min(oc, max(8, ((_TARGET_HALF_BYTES // (lanes * itemsize)) // 8) * 8))
        x_v = x.reshape(n, 2, oc, hw)            # free reshape (row-major)
        grid = (n, pl.cdiv(oc, oc_tile), pl.cdiv(hw, hw_tile))
        in_spec = pl.BlockSpec((1, 2, oc_tile, hw_tile), lambda i, j, k: (i, 0, j, k))
        out_spec = pl.BlockSpec((1, oc_tile, hw_tile), lambda i, j, k: (i, j, k))
        out_shape = jax.ShapeDtypeStruct((n, oc, hw), x.dtype)
        semantics = ("parallel", "parallel", "parallel")

    out = pl.pallas_call(
        _mfm_kernel,
        out_shape=out_shape,
        grid_spec=pltpu.PrefetchScalarGridSpec(
            num_scalar_prefetch=0,
            grid=grid,
            in_specs=[in_spec],
            out_specs=out_spec,
        ),
        compiler_params=pltpu.CompilerParams(dimension_semantics=semantics),
        cost_estimate=cost,
    )(x_v)
    return out.reshape(n, oc, h, w)


def mfm_reference(x: jax.Array, out_channels: int) -> jax.Array:
    return jnp.maximum(x[:, :out_channels], x[:, out_channels:2 * out_channels])


if __name__ == "__main__":
    key = jax.random.PRNGKey(0)
    k0, k1, k2 = jax.random.split(key, 3)

    # Main check: small NCHW shape consistent with the module (OC=4, F % 128 == 0).
    out_channels = 4
    x = jax.random.normal(k0, (2, 2 * out_channels, 16, 16), dtype=jnp.float32)
    out = mfm_forward(x, out_channels)
    jax.block_until_ready(out)
    assert out.shape == (2, out_channels, 16, 16)
    assert jnp.array_equal(out, mfm_reference(x, out_channels)), "f32 mismatch"

    # bf16: max is a pure select, so results match the reference exactly.
    xb = x.astype(jnp.bfloat16)
    outb = mfm_forward(xb, out_channels)
    jax.block_until_ready(outb)
    assert jnp.array_equal(outb, mfm_reference(xb, out_channels)), "bf16 mismatch"

    # Fallback path: H*W not a multiple of 128 (OC=3, 7x7 spatial).
    x2 = jax.random.normal(k1, (2, 6, 7, 7), dtype=jnp.float32)
    out2 = mfm_forward(x2, 3)
    jax.block_until_ready(out2)
    assert jnp.array_equal(out2, mfm_reference(x2, 3)), "fallback path mismatch"

    # Small-batch shape that exercises feature-axis tiling + megacore step split.
    x3 = jax.random.normal(k2, (1, 96, 32, 32), dtype=jnp.float32)  # OC=48
    out3 = mfm_forward(x3, 48)
    jax.block_until_ready(out3)
    assert jnp.array_equal(out3, mfm_reference(x3, 48)), "tiled path mismatch"

    print("KERNEL_OK")
</pallas_src>

<mosaic_0001>
module attributes {stable_mosaic.version = 11 : i64} {
  func.func @_mfm_kernel(%arg0: i32, %arg1: i32, %arg2: memref<1x2x8x128xf32, #tpu.memory_space<vmem>>, %arg3: memref<1x8x128xf32, #tpu.memory_space<vmem>>) attributes {dimension_semantics = [#tpu.dimension_semantics<parallel>, #tpu.dimension_semantics<parallel>], iteration_bounds = array<i64: 2, 1>, scalar_prefetch = 0 : i64, scratch_operands = 0 : i64, tpu.core_type = #tpu.core_type<tc>, window_params = [{transform_indices = @transform_0, window_bounds = array<i64: 1, 2, 8, 128>}, {transform_indices = @transform_1, window_bounds = array<i64: 1, 8, 128>}]} {
    %c0 = arith.constant 0 : index
    %c0_0 = arith.constant 0 : index
    %c0_1 = arith.constant 0 : index
    %c0_2 = arith.constant 0 : index
    %0 = vector.load %arg2[%c0, %c0_0, %c0_1, %c0_2] : memref<1x2x8x128xf32, #tpu.memory_space<vmem>>, vector<1x2x8x128xf32>
    %1 = vector.extract_strided_slice %0 {offsets = [0, 0, 0, 0], sizes = [1, 1, 8, 128], strides = [1, 1, 1, 1]} : vector<1x2x8x128xf32> to vector<1x1x8x128xf32>
    %2 = vector.shape_cast %1 : vector<1x1x8x128xf32> to vector<1x8x128xf32>
    %3 = vector.extract_strided_slice %0 {offsets = [0, 1, 0, 0], sizes = [1, 1, 8, 128], strides = [1, 1, 1, 1]} : vector<1x2x8x128xf32> to vector<1x1x8x128xf32>
    %4 = vector.shape_cast %3 : vector<1x1x8x128xf32> to vector<1x8x128xf32>
    %5 = arith.maximumf %2, %4 : vector<1x8x128xf32>
    %c0_3 = arith.constant 0 : index
    %c0_4 = arith.constant 0 : index
    %c0_5 = arith.constant 0 : index
    %6 = vector.load %arg3[%c0_3, %c0_4, %c0_5] : memref<1x8x128xf32, #tpu.memory_space<vmem>>, vector<1x8x128xf32>
    tpu.vector_store %arg3[%c0_3, %c0_4, %c0_5], %5 {strides = array<i32>} : memref<1x8x128xf32, #tpu.memory_space<vmem>>, vector<1x8x128xf32>,
    return
  }
  func.func @transform_0(%arg0: i32, %arg1: i32) -> (i32, i32, i32, i32) {
    %c0_i32 = arith.constant 0 : i32
    %c0_i32_0 = arith.constant 0 : i32
    %c0_i32_1 = arith.constant 0 : i32
    return %arg0, %c0_i32, %arg1, %c0_i32_0 : i32, i32, i32, i32
  }
  func.func @transform_1(%arg0: i32, %arg1: i32) -> (i32, i32, i32) {
    %c0_i32 = arith.constant 0 : i32
    %c0_i32_0 = arith.constant 0 : i32
    return %arg0, %arg1, %c0_i32 : i32, i32, i32
  }
}

</mosaic_0001>

<bundles_post_ra>
// kernel: tpu_custom_call.1
= control target key start
LH: loop header
LB: loop body
LE: loop exit
PB: predicated region body
PF: predicated region fallthrough
CT: control target
= control target key end

     0   :  { %6 = vsyncpa [#allocation3], 0  ;;  %s582_s0 = inlined_call_operand.hbm [shape: f32[2,2,8,128], index: 0, kind: input, shape index: {}]   ;;  %s583_s1 = inlined_call_operand.hbm [shape: f32[2,8,128], index: 1, kind: output, shape index: {}]  }
   0x1   :  { %8 = vsyncpa [#allocation3 + $0x1], 0 }
   0x2   :  { %9 = vsyncpa [#allocation4], 0 }
   0x3   :  { %11 = vsyncpa [#allocation4 + $0x1], 0  ;;  %s461_s6 = smov 0   ;;  %s463_s7 = smov 0  }
   0x4   :  { %s465_s8 = smov 0   ;;  %s467_s9 = smov 0  }
   0x5   :  { %s469_s10 = smov 0   ;;  %s471_s11 = smov 0  }
   0x6 LB: > { %s256_s12 = sadd.s32 4294967295, %s447_s11   ;;  %s257_s13 = sadd.s32 4294967294, %s447_s11   ;;  %s447_s11 = sphi %s471_s11, %s17_s11   ;;  %s443_s10 = sphi %s469_s10, %s592_s10   ;;  %s439_s9 = sphi %s467_s9, %s591_s9   ;;  %s435_s8 = sphi %s465_s8, %s590_s8   ;;  %s431_s7 = sphi %s463_s7, %s589_s7   ;;  %s427_s6 = sphi %s461_s6, %s588_s6  }
   0x7   : > { %s29_s14 = sadd.s32 1, %s443_s10  ;;  %s38_s15 = sadd.s32 1, %s435_s8 }
   0x8   : > { %p31_p0 = scmp.ge.s32.totalorder %s29_s14, 2  ;;  %p45_p1 = scmp.ne.s32.totalorder %s435_s8, %s431_s7 }
   0x9   : > { %p46_p2 = scmp.eq.s32.totalorder %s447_s11, 0  ;;  %p51_p3 = scmp.ne.s32.totalorder %s431_s7, %s427_s6 }
   0xa   : > { %s594_s14 = smov (%p31_p0, %s29_s14), 0  ;;  %p52_p5 = scmp.eq.s32.totalorder %s256_s12, 0 }
   0xb   : > { %p502_p4 = por %p46_p2, %p45_p1  ;;  %s33_s17 = ssub.s32 %s443_s10, %s594_s14 }
   0xc   : > { %p77_p6 = scmp.eq.s32.totalorder %s256_s12, 1  ;;  %p36_p7 = scmp.eq.s32.totalorder %s33_s17, 0 }
   0xd   : > { %p508_p8 = por %p52_p5, %p51_p3  ;;  %p83_p10 = scmp.eq.s32.totalorder %s257_s13, 1 }
   0xe   : > { %p512_p9 = por %p77_p6, %p45_p1  ;;  %p259_p12 = scmp.ge.s32.totalorder %s447_s11, 2 }
   0xf   : > { %s517_s20 = scalar_select %p36_p7, %s435_s8, %s38_s15  }
  0x10   : > { %p519_p11 = por %p83_p10, %p51_p3  ;;  %p283_p13 = scmp.lt.s32.totalorder %s447_s11, 2 }
  0x11   : > { %s103_s22 = sand.u32 1, %s435_s8   ;;  %s270_s24 = sshll.u32 %s443_s10, 4 }
  0x12   : > { %s260_s23 = sshll.u32 %s103_s22, 4  ;;  %s113_s27 = scalar_lea.hbm %s582_s0, %s270_s24 }
  0x13   : > { %s107_s28 = scalar_lea.vmem [#allocation2], %s260_s23  ;;  %s114_s30 = sshll.u32 %s113_s27, 4  ;;  %s115_s30 = int_to_ptr.hbm [resolvable:$true] %s114_s30 }
  0x14   : > { %s116_s29 = sshll.u32 %s107_s28, 4  ;;  %p276_p0 = pnand %p283_p13, %p502_p4  ;;  %s117_s29 = int_to_ptr.vmem [resolvable:$true] %s116_s29 }
  0x15   : > { %p263_p1 = scmp.ge.s32.totalorder %s447_s11, 1  ;;  %s104_s2 = scalar_lea.sflag [#allocation3], %s103_s22 }
  0x16   : > { %s449_s3 = smov 128   ;;  %s450_s4 = smov 8  }
  0x17   : > { %278 = dma.hbm_to_vmem [thread:$0]  (!%p276_p0), %s115_s30, 256, %s117_s29, %s104_s2, %s449_s3, %s449_s3, %s450_s4  }
  0x18   : > { %p124_p2 = scmp.lt.s32.totalorder %s447_s11, 3 }
  0x1a   : > { %p125_p3 = pnand %p263_p1, %p124_p2 }
  0x1b   : > { %s535_s5 = sand.u32 (!%p125_p3), 1, %s431_s7  }
  0x1c   : > { %128 = sbr.rel (%p125_p3) target bundleno = 49 (0x31), region = 24  ;;  %s264_s12 = sshll.u32 (!%p125_p3), %s535_s5, 4 }
  0x1d   : > { %s131_s13 = scalar_lea.sflag (!%p125_p3), [#allocation3], %s535_s5  ;;  %s134_s15 = scalar_lea.vmem (!%p125_p3), [#allocation2], %s264_s12 }
  0x21   : > { %418 = dma.done.wait (%p508_p8), %s131_s13, 256  }
  0x22   : > { %420 = vsyncadd (%p508_p8), %s131_s13, 4294967040  ;;  %s265_s16 = sshll.u32 %s535_s5, 3  ;;  %s267_s17 = sshll.u32 %s439_s9, 3  ;;  %v154_v0 = vld [vmem:[%s134_s15] sm:$0xff]  ;;  %v155_v1 = vld [vmem:[%s134_s15 + $0x8] sm:$0xff] }
  0x23   : > { %s170_s24 = scalar_lea.hbm %s583_s1, %s267_s17  ;;  %s153_s25 = scalar_lea.vmem [#allocation5], %s265_s16  ;;  %v156_v2 = vmax.f32 %v154_v0, %v155_v1 }
  0x24   : > { %s172_s26 = sshll.u32 %s153_s25, 4  ;;  %s174_s27 = sshll.u32 %s170_s24, 4  ;;  %s173_s26 = int_to_ptr.vmem [resolvable:$true] %s172_s26  ;;  %s175_s27 = int_to_ptr.hbm [resolvable:$true] %s174_s27 }
  0x25   : > { %157 = vst [vmem:[%s153_s25] sm:$0xff] %v156_v2  ;;  %s159_s18 = scalar_lea.sflag [#allocation4], %s535_s5  ;;  %s379_s28 = sshra.s32 %s175_s27, 4  ;;  %s380_s28 = int_to_ptr.hbm [resolvable:$true] %s379_s28 }
  0x26   : > { %s381_s29 = scalar_lea.hbm %s380_s28, 8  ;;  %s385_s2 = scalar_lea.hbm %s583_s1, 16 }
  0x27   : > { %p382_p4 = scmp.ne.s32.totalorder %s380_s28, %s381_s29  ;;  %p386_p7 = scmp.lt.s32.totalorder %s380_s28, %s583_s1 }
  0x28   : > { %p387_p8 = scmp.lt.s32.totalorder %s385_s2, %s381_s29 }
  0x29   : > { %p383_p5 = pnand %p382_p4, %p512_p9 }
  0x2a   : > { %p388_p10 = por %p387_p8, %p386_p7 }
  0x2b   : > { %p384_p6 = pneg %p383_p5 }
  0x2d   : > { %p389_p13 = pnand %p388_p10, %p384_p6 }
  0x2f   : > { %392 = shalt.err (!%p389_p13)
}
  0x30   : > { %273 = dma.vmem_to_hbm [thread:$0]  (%p512_p9), %s173_s26, 128, %s175_s27, %s159_s18  }
  0x31 PF: > { %s186_s5 = sand.u32 1, %s427_s6   ;;  %p280_p0 = pnand %p259_p12, %p519_p11 }
  0x32   : > { %s187_s12 = scalar_lea.sflag [#allocation4], %s186_s5 }
  0x33   : > { %p281_p1 = pneg %p280_p0 }
  0x35   : > { %422 = dma.done.wait (%p281_p1), %s187_s12, 128  }
  0x36   : > { %424 = vsyncadd (%p281_p1), %s187_s12, 4294967168  ;;  %s17_s11 = sadd.s32 1, %s447_s11   ;;  %s588_s6 = smov %s431_s7 }
  0x37   : > { %p14_p2 = scmp.ge.s32.totalorder %s17_s11, 4   ;;  %s589_s7 = smov %s435_s8 }
  0x38   : > { %s590_s8 = smov %s517_s20  ;;  %s591_s9 = smov %s443_s10 }
  0x39   : > { %s592_s10 = smov %s594_s14  ;;  %16 = sbr.rel (!%p14_p2) target bundleno = 6 (0x6), region = 69 }
  0x3e   :  { %193 = vsyncpa [#allocation3], 1 }
  0x3f   :  { %195 = vsyncpa [#allocation3 + $0x1], 1 }
  0x40   :  { %196 = vsyncpa [#allocation4], 1 }
  0x41   :  { %198 = vsyncpa [#allocation4 + $0x1], 1 }

</bundles_post_ra>
